<compile_context>
chip_gen: v7x
topology: tpu7x:2x2x1
jax: 0.10.0
libtpu: 0.0.40
codegen_flags: <defaults>
</compile_context>

<pallas_src>
import functools

import jax
import jax.numpy as jnp
from jax.experimental import pallas as pl
from jax.experimental.pallas import tpu as pltpu

IN_DIM = 1024
HID_DIM = 512
OUT_DIM = 2
OUT_PAD = 128  # lane-dense padded output width


def _classifier_ft_kernel(x_ref, w1_ref, b1_ref, w2_ref, b2_ref, o_ref):
    # x_ref:  (TILE_B, 1024) bf16      w1_ref: (1024, 512) bf16
    # b1_ref: (1, 512) f32             w2_ref: (512, 128) bf16 (zero-padded)
    # b2_ref: (1, 128) f32 (zero-pad)  o_ref:  (TILE_B, 128) f32
    x = x_ref[...]
    h = jnp.dot(x, w1_ref[...], preferred_element_type=jnp.float32)
    h = jnp.maximum(h + b1_ref[...], 0.0)                    # bias + ReLU (VPU)
    y = jnp.dot(h.astype(jnp.bfloat16), w2_ref[...],
                preferred_element_type=jnp.float32)
    o_ref[...] = y + b2_ref[...]


def _round_up(n, m):
    return ((n + m - 1) // m) * m


@functools.partial(jax.jit, static_argnames=("tile_b",))
def classifier_ft_forward(x, w1, b1, w2, b2, *, tile_b=256):
    """x: (B, 1024) f32.  w1: (1024, 512), b1: (1, 512), w2: (512, 2), b2: (1, 2).

    Returns (B, 2) f32.
    """
    B = x.shape[0]

    # Pick an effective batch tile: at most `tile_b`, at least a multiple of 8.
    eff_tile = min(tile_b, _round_up(B, 8))
    B_pad = _round_up(B, eff_tile)
    n_tiles = B_pad // eff_tile

    # Pad batch to a tile multiple; cast matmul inputs to bf16.
    x_p = jnp.zeros((B_pad, IN_DIM), jnp.bfloat16).at[:B].set(
        x.astype(jnp.bfloat16))
    w1_b = w1.astype(jnp.bfloat16)

    # Lane-dense second layer: zero-pad (512, 2) -> (512, 128), (1, 2) -> (1, 128).
    w2_p = jnp.zeros((HID_DIM, OUT_PAD), jnp.bfloat16).at[:, :OUT_DIM].set(
        w2.astype(jnp.bfloat16))
    b2_p = jnp.zeros((1, OUT_PAD), jnp.float32).at[:, :OUT_DIM].set(
        b2.astype(jnp.float32))
    b1_f = b1.astype(jnp.float32)

    out_padded = pl.pallas_call(
        _classifier_ft_kernel,
        out_shape=jax.ShapeDtypeStruct((B_pad, OUT_PAD), jnp.float32),
        grid=(n_tiles,),
        in_specs=[
            pl.BlockSpec((eff_tile, IN_DIM), lambda i: (i, 0)),   # x: tiled over batch
            pl.BlockSpec((IN_DIM, HID_DIM), lambda i: (0, 0)),    # w1: resident
            pl.BlockSpec((1, HID_DIM), lambda i: (0, 0)),         # b1: resident
            pl.BlockSpec((HID_DIM, OUT_PAD), lambda i: (0, 0)),   # w2 (padded): resident
            pl.BlockSpec((1, OUT_PAD), lambda i: (0, 0)),         # b2 (padded): resident
        ],
        out_specs=pl.BlockSpec((eff_tile, OUT_PAD), lambda i: (i, 0)),
        compiler_params=pltpu.CompilerParams(
            dimension_semantics=("parallel",),
        ),
    )(x_p, w1_b, b1_f, w2_p, b2_p)

    # Strip batch padding and lane padding in the wrapper (free layout plumbing).
    return out_padded[:B, :OUT_DIM]


def init_params(key):
    """Deterministic init mimicking torch.nn.Linear default (U[-1/sqrt(fan_in), +])."""
    k1, k2, k3, k4 = jax.random.split(key, 4)
    bound1 = 1.0 / jnp.sqrt(float(IN_DIM))
    bound2 = 1.0 / jnp.sqrt(float(HID_DIM))
    # Stored as (in_features, out_features); torch stores (out, in).
    w1 = jax.random.uniform(k1, (IN_DIM, HID_DIM), jnp.float32, -bound1, bound1)
    b1 = jax.random.uniform(k2, (1, HID_DIM), jnp.float32, -bound1, bound1)
    w2 = jax.random.uniform(k3, (HID_DIM, OUT_DIM), jnp.float32, -bound2, bound2)
    b2 = jax.random.uniform(k4, (1, OUT_DIM), jnp.float32, -bound2, bound2)
    return w1, b1, w2, b2


def reference_forward(x, w1, b1, w2, b2):
    h = jnp.maximum(x @ w1 + b1, 0.0)
    return h @ w2 + b2


if __name__ == "__main__":
    key = jax.random.PRNGKey(0)
    kx, kp = jax.random.split(key)

    B = 8  # small batch
    x = jax.random.normal(kx, (B, IN_DIM), jnp.float32)
    w1, b1, w2, b2 = init_params(kp)

    out = classifier_ft_forward(x, w1, b1, w2, b2)
    out = jax.block_until_ready(out)

    ref_f32 = reference_forward(x, w1, b1, w2, b2)
    assert out.shape == (B, OUT_DIM)
    # bf16 matmul inputs with f32 accumulation -> slightly looser tolerance.
    assert jnp.allclose(out, ref_f32, atol=2e-2, rtol=2e-2), "mismatch vs f32 reference"

    # Tighter check against a reference using the same bf16-cast inputs.
    ref_bf16 = reference_forward(
        x.astype(jnp.bfloat16).astype(jnp.float32),
        w1.astype(jnp.bfloat16).astype(jnp.float32),
        b1,
        w2.astype(jnp.bfloat16).astype(jnp.float32),
        b2,
    )
    assert jnp.allclose(out, ref_bf16, atol=2e-3, rtol=2e-3), "mismatch vs bf16 reference"

    print("KERNEL_OK")
</pallas_src>

<mosaic_0001>
module attributes {stable_mosaic.version = 11 : i64} {
  func.func @_classifier_ft_kernel(%arg0: i32, %arg1: memref<8x1024xbf16, #tpu.memory_space<vmem>>, %arg2: memref<1024x512xbf16, #tpu.memory_space<vmem>>, %arg3: memref<1x512xf32, #tpu.memory_space<vmem>>, %arg4: memref<512x128xbf16, #tpu.memory_space<vmem>>, %arg5: memref<1x128xf32, #tpu.memory_space<vmem>>, %arg6: memref<8x128xf32, #tpu.memory_space<vmem>>) attributes {dimension_semantics = [#tpu.dimension_semantics<parallel>], iteration_bounds = array<i64: 1>, scalar_prefetch = 0 : i64, scratch_operands = 0 : i64, tpu.core_type = #tpu.core_type<tc>, window_params = [{transform_indices = @transform_0, window_bounds = array<i64: 8, 1024>}, {pipeline_mode = #tpu.pipeline_mode<synchronous>, transform_indices = @transform_1, window_bounds = array<i64: 1024, 512>}, {pipeline_mode = #tpu.pipeline_mode<synchronous>, transform_indices = @transform_2, window_bounds = array<i64: 1, 512>}, {pipeline_mode = #tpu.pipeline_mode<synchronous>, transform_indices = @transform_3, window_bounds = array<i64: 512, 128>}, {pipeline_mode = #tpu.pipeline_mode<synchronous>, transform_indices = @transform_4, window_bounds = array<i64: 1, 128>}, {transform_indices = @transform_5, window_bounds = array<i64: 8, 128>}]} {
    %c0 = arith.constant 0 : index
    %c0_0 = arith.constant 0 : index
    %0 = vector.load %arg1[%c0, %c0_0] : memref<8x1024xbf16, #tpu.memory_space<vmem>>, vector<8x1024xbf16>
    %c0_1 = arith.constant 0 : index
    %c0_2 = arith.constant 0 : index
    %1 = vector.load %arg2[%c0_1, %c0_2] : memref<1024x512xbf16, #tpu.memory_space<vmem>>, vector<1024x512xbf16>
    %cst = arith.constant dense<0.000000e+00> : vector<8x512xf32>
    %2 = tpu.matmul %0, %1, %cst {dimension_numbers = #tpu.dot_dimension_numbers<[1], [0], [0], [1], [0, 0, 1, 1], [], []>} : vector<8x1024xbf16>, vector<1024x512xbf16>, vector<8x512xf32> -> vector<8x512xf32>
    %c0_3 = arith.constant 0 : index
    %c0_4 = arith.constant 0 : index
    %3 = vector.load %arg3[%c0_3, %c0_4] : memref<1x512xf32, #tpu.memory_space<vmem>>, vector<1x512xf32>
    %4 = vector.broadcast %3 : vector<1x512xf32> to vector<8x512xf32>
    %5 = arith.addf %2, %4 : vector<8x512xf32>
    %cst_5 = arith.constant 0.000000e+00 : f32
    %6 = vector.broadcast %cst_5 : f32 to vector<8x512xf32>
    %7 = arith.maximumf %5, %6 : vector<8x512xf32>
    %8 = arith.truncf %7 : vector<8x512xf32> to vector<8x512xbf16>
    %c0_6 = arith.constant 0 : index
    %c0_7 = arith.constant 0 : index
    %9 = vector.load %arg4[%c0_6, %c0_7] : memref<512x128xbf16, #tpu.memory_space<vmem>>, vector<512x128xbf16>
    %cst_8 = arith.constant dense<0.000000e+00> : vector<8x128xf32>
    %10 = tpu.matmul %8, %9, %cst_8 {dimension_numbers = #tpu.dot_dimension_numbers<[1], [0], [0], [1], [0, 0, 1, 1], [], []>} : vector<8x512xbf16>, vector<512x128xbf16>, vector<8x128xf32> -> vector<8x128xf32>
    %c0_9 = arith.constant 0 : index
    %c0_10 = arith.constant 0 : index
    %11 = vector.load %arg5[%c0_9, %c0_10] : memref<1x128xf32, #tpu.memory_space<vmem>>, vector<1x128xf32>
    %12 = vector.broadcast %11 : vector<1x128xf32> to vector<8x128xf32>
    %13 = arith.addf %10, %12 : vector<8x128xf32>
    %c0_11 = arith.constant 0 : index
    %c0_12 = arith.constant 0 : index
    %14 = vector.load %arg6[%c0_11, %c0_12] : memref<8x128xf32, #tpu.memory_space<vmem>>, vector<8x128xf32>
    tpu.vector_store %arg6[%c0_11, %c0_12], %13 {strides = array<i32>} : memref<8x128xf32, #tpu.memory_space<vmem>>, vector<8x128xf32>,
    return
  }
  func.func @transform_0(%arg0: i32) -> (i32, i32) {
    %c0_i32 = arith.constant 0 : i32
    %c0_i32_0 = arith.constant 0 : i32
    return %arg0, %c0_i32 : i32, i32
  }
  func.func @transform_1(%arg0: i32) -> (i32, i32) {
    %c0_i32 = arith.constant 0 : i32
    %c0_i32_0 = arith.constant 0 : i32
    %c0_i32_1 = arith.constant 0 : i32
    return %c0_i32, %c0_i32_0 : i32, i32
  }
  func.func @transform_2(%arg0: i32) -> (i32, i32) {
    %c0_i32 = arith.constant 0 : i32
    %c0_i32_0 = arith.constant 0 : i32
    %c0_i32_1 = arith.constant 0 : i32
    return %c0_i32, %c0_i32_0 : i32, i32
  }
  func.func @transform_3(%arg0: i32) -> (i32, i32) {
    %c0_i32 = arith.constant 0 : i32
    %c0_i32_0 = arith.constant 0 : i32
    %c0_i32_1 = arith.constant 0 : i32
    return %c0_i32, %c0_i32_0 : i32, i32
  }
  func.func @transform_4(%arg0: i32) -> (i32, i32) {
    %c0_i32 = arith.constant 0 : i32
    %c0_i32_0 = arith.constant 0 : i32
    %c0_i32_1 = arith.constant 0 : i32
    return %c0_i32, %c0_i32_0 : i32, i32
  }
  func.func @transform_5(%arg0: i32) -> (i32, i32) {
    %c0_i32 = arith.constant 0 : i32
    %c0_i32_0 = arith.constant 0 : i32
    return %arg0, %c0_i32 : i32, i32
  }
}

</mosaic_0001>

<bundles_post_ra>
// kernel: classifier_ft_forward.1
= control target key start
LH: loop header
LB: loop body
LE: loop exit
PB: predicated region body
PF: predicated region fallthrough
CT: control target
= control target key end

     0   :  { %s4021_s1 = inlined_call_operand.vmem [shape: bf16[1024,512], index: 1, kind: input, shape index: {}]   ;;  %s4022_s0 = inlined_call_operand.vmem [shape: bf16[8,1024], index: 0, kind: input, shape index: {}]   ;;  %s4023_s3 = inlined_call_operand.vmem [shape: bf16[512,128], index: 3, kind: input, shape index: {}]   ;;  %s4024_s2 = inlined_call_operand.vmem [shape: f32[1,512], index: 2, kind: input, shape index: {}]   ;;  %s4025_s4 = inlined_call_operand.vmem [shape: f32[1,128], index: 4, kind: input, shape index: {}]   ;;  %s4026_s5 = inlined_call_operand.vmem [shape: f32[8,128], index: 5, kind: output, shape index: {}]  }
   0x1   :  { %v2664_v0 = vld [vmem:[%s4021_s1 + $0x4] ss:$16 sps:$4 sm:$0xff]   ;;  %v2666_v1 = vld [vmem:[%s4021_s1 + $0xc] ss:$16 sps:$4 sm:$0xff]   ;;  %v2668_v2 = vld [vmem:[%s4021_s1] ss:$16 sps:$4 sm:$0xff]  }
   0x2   :  { %1611 = vmatprep.subr.bf16.mxu0 %v2664_v0  ;;  %v2669_v3 = vld [vmem:[%s4021_s1 + $0x8] ss:$16 sps:$4 sm:$0xff]   ;;  %1775 = vmatprep.subr.bf16.mxu1 %v2666_v1  ;;  %v2670_v4 = vld [vmem:[%s4021_s1 + $0x24] ss:$16 sps:$4 sm:$0xff]   ;;  %v2672_v5 = vld [vmem:[%s4021_s1 + $0x2c] ss:$16 sps:$4 sm:$0xff]  }
   0x3   :  { %1612 = vmatpush1.bf16.msra.mxu0 %v2668_v2  ;;  %1776 = vmatpush1.bf16.msra.mxu1 %v2669_v3  ;;  %v2674_v6 = vld [vmem:[%s4021_s1 + $0x20] ss:$16 sps:$4 sm:$0xff]   ;;  %v2675_v7 = vld [vmem:[%s4021_s1 + $0x28] ss:$16 sps:$4 sm:$0xff]   ;;  %v2676_v8 = vld [vmem:[%s4021_s1 + $0x44] ss:$16 sps:$4 sm:$0xff]  }
   0x4   :  { %1613 = vmatprep.subr.bf16.mxu0 %v2670_v4  ;;  %1777 = vmatprep.subr.bf16.mxu1 %v2672_v5  ;;  %v2678_v9 = vld [vmem:[%s4021_s1 + $0x4c] ss:$16 sps:$4 sm:$0xff]   ;;  %v2680_v10 = vld [vmem:[%s4021_s1 + $0x40] ss:$16 sps:$4 sm:$0xff]   ;;  %v2681_v11 = vld [vmem:[%s4021_s1 + $0x48] ss:$16 sps:$4 sm:$0xff]  }
   0x5   :  { %v2682_v12 = vld [vmem:[%s4021_s1 + $0x64] ss:$16 sps:$4 sm:$0xff]   ;;  %v2684_v13 = vld [vmem:[%s4021_s1 + $0x6c] ss:$16 sps:$4 sm:$0xff]   ;;  %v2686_v14 = vld [vmem:[%s4021_s1 + $0x60] ss:$16 sps:$4 sm:$0xff]  }
   0x6   :  { %v2687_v15 = vld [vmem:[%s4021_s1 + $0x68] ss:$16 sps:$4 sm:$0xff]   ;;  %v2688_v16 = vld [vmem:[%s4021_s1 + $0x84] ss:$16 sps:$4 sm:$0xff]   ;;  %v2690_v17 = vld [vmem:[%s4021_s1 + $0x8c] ss:$16 sps:$4 sm:$0xff]  }
   0x7   :  { %1614 = vmatpush1.bf16.msra.mxu0 %v2674_v6  ;;  %1778 = vmatpush1.bf16.msra.mxu1 %v2675_v7  ;;  %v2692_v18 = vld [vmem:[%s4021_s1 + $0x80] ss:$16 sps:$4 sm:$0xff]   ;;  %v2693_v19 = vld [vmem:[%s4021_s1 + $0x88] ss:$16 sps:$4 sm:$0xff]   ;;  %v2694_v20 = vld [vmem:[%s4021_s1 + $0xa4] ss:$16 sps:$4 sm:$0xff]  }
   0x8   :  { %1615 = vmatprep.subr.bf16.mxu0 %v2676_v8  ;;  %1779 = vmatprep.subr.bf16.mxu1 %v2678_v9  ;;  %v2696_v21 = vld [vmem:[%s4021_s1 + $0xac] ss:$16 sps:$4 sm:$0xff]   ;;  %v2698_v22 = vld [vmem:[%s4021_s1 + $0xa0] ss:$16 sps:$4 sm:$0xff]   ;;  %v2699_v23 = vld [vmem:[%s4021_s1 + $0xa8] ss:$16 sps:$4 sm:$0xff]  }
   0x9   :  { %v2700_v24 = vld [vmem:[%s4021_s1 + $0xc4] ss:$16 sps:$4 sm:$0xff]   ;;  %v2702_v25 = vld [vmem:[%s4021_s1 + $0xcc] ss:$16 sps:$4 sm:$0xff]   ;;  %v2704_v26 = vld [vmem:[%s4021_s1 + $0xc0] ss:$16 sps:$4 sm:$0xff]  }
   0xa   :  { %v2705_v27 = vld [vmem:[%s4021_s1 + $0xc8] ss:$16 sps:$4 sm:$0xff]   ;;  %v2706_v28 = vld [vmem:[%s4021_s1 + $0xe4] ss:$16 sps:$4 sm:$0xff]   ;;  %v2708_v29 = vld [vmem:[%s4021_s1 + $0xec] ss:$16 sps:$4 sm:$0xff]  }
   0xb   :  { %1616 = vmatpush1.bf16.msra.mxu0 %v2680_v10  ;;  %1780 = vmatpush1.bf16.msra.mxu1 %v2681_v11  ;;  %v2710_v30 = vld [vmem:[%s4021_s1 + $0xe0] ss:$16 sps:$4 sm:$0xff]   ;;  %v2711_v31 = vld [vmem:[%s4021_s1 + $0xe8] ss:$16 sps:$4 sm:$0xff]   ;;  %v2712_v32 = vld [vmem:[%s4021_s1 + $0x104] ss:$16 sps:$4 sm:$0xff]  }
   0xc   :  { %1617 = vmatprep.subr.bf16.mxu0 %v2682_v12  ;;  %1781 = vmatprep.subr.bf16.mxu1 %v2684_v13  ;;  %v2714_v33 = vld [vmem:[%s4021_s1 + $0x10c] ss:$16 sps:$4 sm:$0xff]   ;;  %v2716_v34 = vld [vmem:[%s4021_s1 + $0x100] ss:$16 sps:$4 sm:$0xff]   ;;  %v2717_v35 = vld [vmem:[%s4021_s1 + $0x108] ss:$16 sps:$4 sm:$0xff]  }
   0xd   :  { %v2718_v36 = vld [vmem:[%s4021_s1 + $0x124] ss:$16 sps:$4 sm:$0xff]   ;;  %v2720_v37 = vld [vmem:[%s4021_s1 + $0x12c] ss:$16 sps:$4 sm:$0xff]   ;;  %v2722_v38 = vld [vmem:[%s4021_s1 + $0x120] ss:$16 sps:$4 sm:$0xff]  }
   0xe   :  { %v2723_v39 = vld [vmem:[%s4021_s1 + $0x128] ss:$16 sps:$4 sm:$0xff]   ;;  %v2724_v40 = vld [vmem:[%s4021_s1 + $0x144] ss:$16 sps:$4 sm:$0xff]   ;;  %v2726_v41 = vld [vmem:[%s4021_s1 + $0x14c] ss:$16 sps:$4 sm:$0xff]  }
   0xf   :  { %1618 = vmatpush1.bf16.msra.mxu0 %v2686_v14  ;;  %1782 = vmatpush1.bf16.msra.mxu1 %v2687_v15  ;;  %v2728_v42 = vld [vmem:[%s4021_s1 + $0x140] ss:$16 sps:$4 sm:$0xff]   ;;  %v2729_v43 = vld [vmem:[%s4021_s1 + $0x148] ss:$16 sps:$4 sm:$0xff]   ;;  %v2730_v44 = vld [vmem:[%s4021_s1 + $0x164] ss:$16 sps:$4 sm:$0xff]  }
  0x10   :  { %1619 = vmatprep.subr.bf16.mxu0 %v2688_v16  ;;  %1783 = vmatprep.subr.bf16.mxu1 %v2690_v17  ;;  %v2732_v45 = vld [vmem:[%s4021_s1 + $0x16c] ss:$16 sps:$4 sm:$0xff]   ;;  %v21_v46 = vld [vmem:[%s4022_s0] sm:$0xff]  ;;  %v2735_v49 = vld [vmem:[%s4021_s1 + $0x168] ss:$16 sps:$4 sm:$0xff]  }
  0x11   :  { %v2734_v47 = vld [vmem:[%s4021_s1 + $0x160] ss:$16 sps:$4 sm:$0xff]   ;;  %v2296_v48 = vcombine.high %v21_v46, %v21_v46  ;;  %v2736_v50 = vld [vmem:[%s4021_s1 + $0x184] ss:$16 sps:$4 sm:$0xff]   ;;  %v2738_v51 = vld [vmem:[%s4021_s1 + $0x18c] ss:$16 sps:$4 sm:$0xff]   ;;  %v2295_v4 = vcombine.low %v21_v46, %v21_v46 }
  0x12   :  { %v2740_v52 = vld [vmem:[%s4021_s1 + $0x180] ss:$16 sps:$4 sm:$0xff]   ;;  %v2741_v53 = vld [vmem:[%s4021_s1 + $0x188] ss:$16 sps:$4 sm:$0xff]   ;;  %v2742_v54 = vld [vmem:[%s4021_s1 + $0x1a4] ss:$16 sps:$4 sm:$0xff]  }
  0x13   :  { %1620 = vmatpush1.bf16.msra.mxu0 %v2692_v18  ;;  %1784 = vmatpush1.bf16.msra.mxu1 %v2693_v19  ;;  %v2744_v55 = vld [vmem:[%s4021_s1 + $0x1ac] ss:$16 sps:$4 sm:$0xff]   ;;  %v2746_v56 = vld [vmem:[%s4021_s1 + $0x1a0] ss:$16 sps:$4 sm:$0xff]   ;;  %v2747_v57 = vld [vmem:[%s4021_s1 + $0x1a8] ss:$16 sps:$4 sm:$0xff]  }
  0x14   :  { %1621 = vmatprep.subr.bf16.mxu0 %v2694_v20  ;;  %1785 = vmatprep.subr.bf16.mxu1 %v2696_v21  ;;  %v2748_v58 = vld [vmem:[%s4021_s1 + $0x1c4] ss:$16 sps:$4 sm:$0xff]   ;;  %v2750_v59 = vld [vmem:[%s4021_s1 + $0x1cc] ss:$16 sps:$4 sm:$0xff]   ;;  %v2752_v60 = vld [vmem:[%s4021_s1 + $0x1c0] ss:$16 sps:$4 sm:$0xff]  }
  0x15   :  { %1643 = vmatprep.mubr.bf16.mxu0 %v2296_v48  ;;  %1807 = vmatprep.mubr.bf16.mxu1 %v2296_v48  ;;  %v2753_v61 = vld [vmem:[%s4021_s1 + $0x1c8] ss:$16 sps:$4 sm:$0xff]   ;;  %v2754_v62 = vld [vmem:[%s4021_s1 + $0x1e4] ss:$16 sps:$4 sm:$0xff]   ;;  %v2756_v63 = vld [vmem:[%s4021_s1 + $0x1ec] ss:$16 sps:$4 sm:$0xff]  }
  0x16   :  { %v2758_v0 = vld [vmem:[%s4021_s1 + $0x1e0] ss:$16 sps:$4 sm:$0xff]   ;;  %v2759_v1 = vld [vmem:[%s4021_s1 + $0x1e8] ss:$16 sps:$4 sm:$0xff]   ;;  %v2764_v2 = vld [vmem:[%s4021_s1 + $0x204] ss:$16 sps:$4 sm:$0xff]  }
  0x17   :  { %1622 = vmatpush1.bf16.msra.mxu0 %v2698_v22  ;;  %1786 = vmatpush1.bf16.msra.mxu1 %v2699_v23  ;;  %v2767_v3 = vld [vmem:[%s4021_s1 + $0x20c] ss:$16 sps:$4 sm:$0xff]   ;;  %v2762_v5 = vld [vmem:[%s4021_s1 + $0x200] ss:$16 sps:$4 sm:$0xff]   ;;  %v2765_v6 = vld [vmem:[%s4021_s1 + $0x208] ss:$16 sps:$4 sm:$0xff]  }
  0x18   :  { %1623 = vmatprep.subr.bf16.mxu0 %v2700_v24  ;;  %1787 = vmatprep.subr.bf16.mxu1 %v2702_v25  ;;  %v2770_v7 = vld [vmem:[%s4021_s1 + $0x224] ss:$16 sps:$4 sm:$0xff]   ;;  %v2773_v8 = vld [vmem:[%s4021_s1 + $0x22c] ss:$16 sps:$4 sm:$0xff]   ;;  %v2768_v9 = vld [vmem:[%s4021_s1 + $0x220] ss:$16 sps:$4 sm:$0xff]  }
  0x19   :  { %v2771_v10 = vld [vmem:[%s4021_s1 + $0x228] ss:$16 sps:$4 sm:$0xff]   ;;  %v2776_v11 = vld [vmem:[%s4021_s1 + $0x244] ss:$16 sps:$4 sm:$0xff]   ;;  %v2779_v12 = vld [vmem:[%s4021_s1 + $0x24c] ss:$16 sps:$4 sm:$0xff]  }
  0x1a   :  { %v2774_v13 = vld [vmem:[%s4021_s1 + $0x240] ss:$16 sps:$4 sm:$0xff]   ;;  %v2777_v14 = vld [vmem:[%s4021_s1 + $0x248] ss:$16 sps:$4 sm:$0xff]   ;;  %v2782_v15 = vld [vmem:[%s4021_s1 + $0x264] ss:$16 sps:$4 sm:$0xff]  }
  0x1b   :  { %1624 = vmatpush1.bf16.msra.mxu0 %v2704_v26  ;;  %1788 = vmatpush1.bf16.msra.mxu1 %v2705_v27  ;;  %v2785_v16 = vld [vmem:[%s4021_s1 + $0x26c] ss:$16 sps:$4 sm:$0xff]   ;;  %v2780_v17 = vld [vmem:[%s4021_s1 + $0x260] ss:$16 sps:$4 sm:$0xff]   ;;  %v2783_v18 = vld [vmem:[%s4021_s1 + $0x268] ss:$16 sps:$4 sm:$0xff]  }
  0x1c   :  { %1625 = vmatprep.subr.bf16.mxu0 %v2706_v28  ;;  %1789 = vmatprep.subr.bf16.mxu1 %v2708_v29  ;;  %v2788_v19 = vld [vmem:[%s4021_s1 + $0x284] ss:$16 sps:$4 sm:$0xff]   ;;  %v2791_v20 = vld [vmem:[%s4021_s1 + $0x28c] ss:$16 sps:$4 sm:$0xff]   ;;  %v2786_v21 = vld [vmem:[%s4021_s1 + $0x280] ss:$16 sps:$4 sm:$0xff]  }
  0x1d   :  { %v2789_v22 = vld [vmem:[%s4021_s1 + $0x288] ss:$16 sps:$4 sm:$0xff]   ;;  %v2794_v23 = vld [vmem:[%s4021_s1 + $0x2a4] ss:$16 sps:$4 sm:$0xff]   ;;  %v2797_v24 = vld [vmem:[%s4021_s1 + $0x2ac] ss:$16 sps:$4 sm:$0xff]  }
  0x1e   :  { %v2792_v25 = vld [vmem:[%s4021_s1 + $0x2a0] ss:$16 sps:$4 sm:$0xff]   ;;  %v2795_v26 = vld [vmem:[%s4021_s1 + $0x2a8] ss:$16 sps:$4 sm:$0xff]   ;;  %v2800_v27 = vld [vmem:[%s4021_s1 + $0x2c4] ss:$16 sps:$4 sm:$0xff]  }
  0x1f   :  { %1626 = vmatpush1.bf16.msra.mxu0 %v2710_v30  ;;  %1790 = vmatpush1.bf16.msra.mxu1 %v2711_v31  ;;  %v2803_v28 = vld [vmem:[%s4021_s1 + $0x2cc] ss:$16 sps:$4 sm:$0xff]   ;;  %v2798_v31 = vld [vmem:[%s4021_s1 + $0x2c0] ss:$16 sps:$4 sm:$0xff]   ;;  %v2825_v48 = vld [vmem:[%s4021_s1 + $0x348] ss:$16 sps:$4 sm:$0xff]  }
  0x20   :  { %1627 = vmatprep.subr.bf16.mxu0 %v2712_v32  ;;  %1791 = vmatprep.subr.bf16.mxu1 %v2714_v33  ;;  %v3394_v29 = vld [vmem:[%s4022_s0 + $0x8] sm:$0xff]  ;;  %v2806_v33 = vld [vmem:[%s4021_s1 + $0x2e4] ss:$16 sps:$4 sm:$0xff]  }
  0x21   :  { %v2298_v30 = vcombine.high %v3394_v29, %v3394_v29  ;;  %v2801_v32 = vld [vmem:[%s4021_s1 + $0x2c8] ss:$16 sps:$4 sm:$0xff]   ;;  %v2827_v46 = vld [vmem:[%s4021_s1 + $0x34c] ss:$16 sps:$4 sm:$0xff]  }
  0x23   :  { %1628 = vmatpush1.bf16.msra.mxu0 %v2716_v34  ;;  %1792 = vmatpush1.bf16.msra.mxu1 %v2717_v35  ;;  %v2809_v34 = vld [vmem:[%s4021_s1 + $0x2ec] ss:$16 sps:$4 sm:$0xff]   ;;  %v2804_v35 = vld [vmem:[%s4021_s1 + $0x2e0] ss:$16 sps:$4 sm:$0xff]  }
  0x24   :  { %1629 = vmatprep.subr.bf16.mxu0 %v2718_v36  ;;  %1793 = vmatprep.subr.bf16.mxu1 %v2720_v37  ;;  %v2807_v36 = vld [vmem:[%s4021_s1 + $0x2e8] ss:$16 sps:$4 sm:$0xff]   ;;  %v2812_v37 = vld [vmem:[%s4021_s1 + $0x304] ss:$16 sps:$4 sm:$0xff]  }
  0x27   :  { %1630 = vmatpush1.bf16.msra.mxu0 %v2722_v38  ;;  %1794 = vmatpush1.bf16.msra.mxu1 %v2723_v39  ;;  %v2815_v38 = vld [vmem:[%s4021_s1 + $0x30c] ss:$16 sps:$4 sm:$0xff]   ;;  %v2810_v39 = vld [vmem:[%s4021_s1 + $0x300] ss:$16 sps:$4 sm:$0xff]  }
  0x28   :  { %1631 = vmatprep.subr.bf16.mxu0 %v2724_v40  ;;  %1795 = vmatprep.subr.bf16.mxu1 %v2726_v41  ;;  %v2813_v40 = vld [vmem:[%s4021_s1 + $0x308] ss:$16 sps:$4 sm:$0xff]   ;;  %v2818_v41 = vld [vmem:[%s4021_s1 + $0x324] ss:$16 sps:$4 sm:$0xff]  }
  0x2b   :  { %1632 = vmatpush1.bf16.msra.mxu0 %v2728_v42  ;;  %1796 = vmatpush1.bf16.msra.mxu1 %v2729_v43  ;;  %v2821_v42 = vld [vmem:[%s4021_s1 + $0x32c] ss:$16 sps:$4 sm:$0xff]   ;;  %v2816_v43 = vld [vmem:[%s4021_s1 + $0x320] ss:$16 sps:$4 sm:$0xff]  }
  0x2c   :  { %1633 = vmatprep.subr.bf16.mxu0 %v2730_v44  ;;  %1797 = vmatprep.subr.bf16.mxu1 %v2732_v45  ;;  %v2819_v44 = vld [vmem:[%s4021_s1 + $0x328] ss:$16 sps:$4 sm:$0xff]   ;;  %v2824_v45 = vld [vmem:[%s4021_s1 + $0x344] ss:$16 sps:$4 sm:$0xff]  }
  0x2f   :  { %1634 = vmatpush1.bf16.msra.mxu0 %v2734_v47  ;;  %1798 = vmatpush1.bf16.msra.mxu1 %v2735_v49  ;;  %v2822_v47 = vld [vmem:[%s4021_s1 + $0x340] ss:$16 sps:$4 sm:$0xff]   ;;  %v2830_v49 = vld [vmem:[%s4021_s1 + $0x364] ss:$16 sps:$4 sm:$0xff]  }
  0x30   :  { %1635 = vmatprep.subr.bf16.mxu0 %v2736_v50  ;;  %1799 = vmatprep.subr.bf16.mxu1 %v2738_v51  ;;  %v2833_v50 = vld [vmem:[%s4021_s1 + $0x36c] ss:$16 sps:$4 sm:$0xff]   ;;  %v2828_v51 = vld [vmem:[%s4021_s1 + $0x360] ss:$16 sps:$4 sm:$0xff]  }
  0x33   :  { %1636 = vmatpush1.bf16.msra.mxu0 %v2740_v52  ;;  %1800 = vmatpush1.bf16.msra.mxu1 %v2741_v53  ;;  %v2831_v52 = vld [vmem:[%s4021_s1 + $0x368] ss:$16 sps:$4 sm:$0xff]   ;;  %v2836_v53 = vld [vmem:[%s4021_s1 + $0x384] ss:$16 sps:$4 sm:$0xff]  }
  0x34   :  { %1637 = vmatprep.subr.bf16.mxu0 %v2742_v54  ;;  %1801 = vmatprep.subr.bf16.mxu1 %v2744_v55  ;;  %v2839_v54 = vld [vmem:[%s4021_s1 + $0x38c] ss:$16 sps:$4 sm:$0xff]   ;;  %v2834_v55 = vld [vmem:[%s4021_s1 + $0x380] ss:$16 sps:$4 sm:$0xff]  }
  0x37   :  { %1638 = vmatpush1.bf16.msra.mxu0 %v2746_v56  ;;  %1802 = vmatpush1.bf16.msra.mxu1 %v2747_v57  ;;  %v2837_v56 = vld [vmem:[%s4021_s1 + $0x388] ss:$16 sps:$4 sm:$0xff]   ;;  %v2842_v57 = vld [vmem:[%s4021_s1 + $0x3a4] ss:$16 sps:$4 sm:$0xff]  }
  0x38   :  { %1639 = vmatprep.subr.bf16.mxu0 %v2748_v58  ;;  %1803 = vmatprep.subr.bf16.mxu1 %v2750_v59  ;;  %v2845_v58 = vld [vmem:[%s4021_s1 + $0x3ac] ss:$16 sps:$4 sm:$0xff]   ;;  %v2840_v59 = vld [vmem:[%s4021_s1 + $0x3a0] ss:$16 sps:$4 sm:$0xff]  }
  0x3b   :  { %1640 = vmatpush1.bf16.msra.mxu0 %v2752_v60  ;;  %1804 = vmatpush1.bf16.msra.mxu1 %v2753_v61  ;;  %v2843_v60 = vld [vmem:[%s4021_s1 + $0x3a8] ss:$16 sps:$4 sm:$0xff]   ;;  %v2848_v61 = vld [vmem:[%s4021_s1 + $0x3c4] ss:$16 sps:$4 sm:$0xff]  }
  0x3c   :  { %1641 = vmatprep.subr.bf16.mxu0 %v2754_v62  ;;  %1805 = vmatprep.subr.bf16.mxu1 %v2756_v63  ;;  %v2851_v62 = vld [vmem:[%s4021_s1 + $0x3cc] ss:$16 sps:$4 sm:$0xff]   ;;  %v2846_v63 = vld [vmem:[%s4021_s1 + $0x3c0] ss:$16 sps:$4 sm:$0xff]  }
  0x3f   :  { %1642 = vmatpush1.bf16.msra.mxu0 %v2758_v0  ;;  %1806 = vmatpush1.bf16.msra.mxu1 %v2759_v1  ;;  %v2849_v0 = vld [vmem:[%s4021_s1 + $0x3c8] ss:$16 sps:$4 sm:$0xff]   ;;  %v2854_v1 = vld [vmem:[%s4021_s1 + $0x3e4] ss:$16 sps:$4 sm:$0xff]  }
  0x40   :  { %1652 = vmatprep.subr.bf16.mxu0 %v2764_v2  ;;  %1816 = vmatprep.subr.bf16.mxu1 %v2767_v3  ;;  %v2857_v2 = vld [vmem:[%s4021_s1 + $0x3ec] ss:$16 sps:$4 sm:$0xff]   ;;  %v2852_v3 = vld [vmem:[%s4021_s1 + $0x3e0] ss:$16 sps:$4 sm:$0xff]  }
  0x42   :  { %1644 = vmatmul.mubr.bf16.vlgmr.msra.gmra.mrb[0].mxu0 %v2295_v4  ;;  %1808 = vmatmul.mubr.bf16.vlgmr.msra.gmra.mrb[0].mxu1 %v2295_v4  ;;  %v2855_v4 = vld [vmem:[%s4021_s1 + $0x3e8] ss:$16 sps:$4 sm:$0xff]  }
  0x43   :  { %1653 = vmatpush1.bf16.msra.mxu0 %v2762_v5  ;;  %1817 = vmatpush1.bf16.msra.mxu1 %v2765_v6  ;;  %v2862_v5 = vld [vmem:[%s4021_s1 + $0x404] ss:$16 sps:$4 sm:$0xff]   ;;  %v2865_v6 = vld [vmem:[%s4021_s1 + $0x40c] ss:$16 sps:$4 sm:$0xff]  }
  0x44   :  { %1654 = vmatprep.subr.bf16.mxu0 %v2770_v7  ;;  %1818 = vmatprep.subr.bf16.mxu1 %v2773_v8  ;;  %v2297_v7 = vcombine.low %v3394_v29, %v3394_v29  ;;  %v2860_v8 = vld [vmem:[%s4021_s1 + $0x400] ss:$16 sps:$4 sm:$0xff]   ;;  %v2895_v29 = vld [vmem:[%s4021_s1 + $0x4ac] ss:$16 sps:$4 sm:$0xff]  }
  0x45   :  { %1684 = vmatprep.mubr.bf16.mxu0 %v2298_v30  ;;  %1848 = vmatprep.mubr.bf16.mxu1 %v2298_v30  ;;  %v2890_v30 = vld [vmem:[%s4021_s1 + $0x4a0] ss:$16 sps:$4 sm:$0xff]  }
  0x47   :  { %1655 = vmatpush1.bf16.msra.mxu0 %v2768_v9  ;;  %1819 = vmatpush1.bf16.msra.mxu1 %v2771_v10  ;;  %v2863_v9 = vld [vmem:[%s4021_s1 + $0x408] ss:$16 sps:$4 sm:$0xff]   ;;  %v2868_v10 = vld [vmem:[%s4021_s1 + $0x424] ss:$16 sps:$4 sm:$0xff]  }
  0x48   :  { %1656 = vmatprep.subr.bf16.mxu0 %v2776_v11  ;;  %1820 = vmatprep.subr.bf16.mxu1 %v2779_v12  ;;  %v3532_v11 = vld [vmem:[%s4022_s0 + $0x10] sm:$0xff]  ;;  %v2871_v12 = vld [vmem:[%s4021_s1 + $0x42c] ss:$16 sps:$4 sm:$0xff]  }
  0x4b   :  { %1657 = vmatpush1.bf16.msra.mxu0 %v2774_v13  ;;  %1821 = vmatpush1.bf16.msra.mxu1 %v2777_v14  ;;  %v2300_v13 = vcombine.high %v3532_v11, %v3532_v11  ;;  %v2866_v14 = vld [vmem:[%s4021_s1 + $0x420] ss:$16 sps:$4 sm:$0xff]  }
  0x4c   :  { %1658 = vmatprep.subr.bf16.mxu0 %v2782_v15  ;;  %1822 = vmatprep.subr.bf16.mxu1 %v2785_v16  ;;  %v2869_v15 = vld [vmem:[%s4021_s1 + $0x428] ss:$16 sps:$4 sm:$0xff]   ;;  %v2874_v16 = vld [vmem:[%s4021_s1 + $0x444] ss:$16 sps:$4 sm:$0xff]  }
  0x4f   :  { %1659 = vmatpush1.bf16.msra.mxu0 %v2780_v17  ;;  %1823 = vmatpush1.bf16.msra.mxu1 %v2783_v18  ;;  %v2877_v17 = vld [vmem:[%s4021_s1 + $0x44c] ss:$16 sps:$4 sm:$0xff]   ;;  %v2872_v18 = vld [vmem:[%s4021_s1 + $0x440] ss:$16 sps:$4 sm:$0xff]  }
  0x50   :  { %1660 = vmatprep.subr.bf16.mxu0 %v2788_v19  ;;  %1824 = vmatprep.subr.bf16.mxu1 %v2791_v20  ;;  %v2875_v19 = vld [vmem:[%s4021_s1 + $0x448] ss:$16 sps:$4 sm:$0xff]   ;;  %v2880_v20 = vld [vmem:[%s4021_s1 + $0x464] ss:$16 sps:$4 sm:$0xff]  }
  0x53   :  { %1661 = vmatpush1.bf16.msra.mxu0 %v2786_v21  ;;  %1825 = vmatpush1.bf16.msra.mxu1 %v2789_v22  ;;  %v2883_v21 = vld [vmem:[%s4021_s1 + $0x46c] ss:$16 sps:$4 sm:$0xff]   ;;  %v2878_v22 = vld [vmem:[%s4021_s1 + $0x460] ss:$16 sps:$4 sm:$0xff]  }
  0x54   :  { %1662 = vmatprep.subr.bf16.mxu0 %v2794_v23  ;;  %1826 = vmatprep.subr.bf16.mxu1 %v2797_v24  ;;  %v2881_v23 = vld [vmem:[%s4021_s1 + $0x468] ss:$16 sps:$4 sm:$0xff]   ;;  %v2886_v24 = vld [vmem:[%s4021_s1 + $0x484] ss:$16 sps:$4 sm:$0xff]  }
  0x57   :  { %1663 = vmatpush1.bf16.msra.mxu0 %v2792_v25  ;;  %1827 = vmatpush1.bf16.msra.mxu1 %v2795_v26  ;;  %v2889_v25 = vld [vmem:[%s4021_s1 + $0x48c] ss:$16 sps:$4 sm:$0xff]   ;;  %v2884_v26 = vld [vmem:[%s4021_s1 + $0x480] ss:$16 sps:$4 sm:$0xff]  }
  0x58   :  { %1664 = vmatprep.subr.bf16.mxu0 %v2800_v27  ;;  %1828 = vmatprep.subr.bf16.mxu1 %v2803_v28  ;;  %v2887_v27 = vld [vmem:[%s4021_s1 + $0x488] ss:$16 sps:$4 sm:$0xff]   ;;  %v2892_v28 = vld [vmem:[%s4021_s1 + $0x4a4] ss:$16 sps:$4 sm:$0xff]  }
  0x5b   :  { %1665 = vmatpush1.bf16.msra.mxu0 %v2798_v31  ;;  %1829 = vmatpush1.bf16.msra.mxu1 %v2801_v32  ;;  %v2893_v31 = vld [vmem:[%s4021_s1 + $0x4a8] ss:$16 sps:$4 sm:$0xff]   ;;  %v2898_v32 = vld [vmem:[%s4021_s1 + $0x4c4] ss:$16 sps:$4 sm:$0xff]  }
  0x5c   :  { %1666 = vmatprep.subr.bf16.mxu0 %v2806_v33  ;;  %1830 = vmatprep.subr.bf16.mxu1 %v2809_v34  ;;  %v2901_v33 = vld [vmem:[%s4021_s1 + $0x4cc] ss:$16 sps:$4 sm:$0xff]   ;;  %v2896_v34 = vld [vmem:[%s4021_s1 + $0x4c0] ss:$16 sps:$4 sm:$0xff]  }
  0x5f   :  { %1667 = vmatpush1.bf16.msra.mxu0 %v2804_v35  ;;  %1831 = vmatpush1.bf16.msra.mxu1 %v2807_v36  ;;  %v2899_v35 = vld [vmem:[%s4021_s1 + $0x4c8] ss:$16 sps:$4 sm:$0xff]   ;;  %v2904_v36 = vld [vmem:[%s4021_s1 + $0x4e4] ss:$16 sps:$4 sm:$0xff]  }
  0x60   :  { %1668 = vmatprep.subr.bf16.mxu0 %v2812_v37  ;;  %1832 = vmatprep.subr.bf16.mxu1 %v2815_v38  ;;  %v2907_v37 = vld [vmem:[%s4021_s1 + $0x4ec] ss:$16 sps:$4 sm:$0xff]   ;;  %v2902_v38 = vld [vmem:[%s4021_s1 + $0x4e0] ss:$16 sps:$4 sm:$0xff]  }
  0x63   :  { %1669 = vmatpush1.bf16.msra.mxu0 %v2810_v39  ;;  %1833 = vmatpush1.bf16.msra.mxu1 %v2813_v40  ;;  %v2905_v39 = vld [vmem:[%s4021_s1 + $0x4e8] ss:$16 sps:$4 sm:$0xff]   ;;  %v2910_v40 = vld [vmem:[%s4021_s1 + $0x504] ss:$16 sps:$4 sm:$0xff]  }
  0x64   :  { %1670 = vmatprep.subr.bf16.mxu0 %v2818_v41  ;;  %1834 = vmatprep.subr.bf16.mxu1 %v2821_v42  ;;  %v2913_v41 = vld [vmem:[%s4021_s1 + $0x50c] ss:$16 sps:$4 sm:$0xff]   ;;  %v2908_v42 = vld [vmem:[%s4021_s1 + $0x500] ss:$16 sps:$4 sm:$0xff]  }
  0x67   :  { %1671 = vmatpush1.bf16.msra.mxu0 %v2816_v43  ;;  %1835 = vmatpush1.bf16.msra.mxu1 %v2819_v44  ;;  %v2911_v43 = vld [vmem:[%s4021_s1 + $0x508] ss:$16 sps:$4 sm:$0xff]   ;;  %v2916_v44 = vld [vmem:[%s4021_s1 + $0x524] ss:$16 sps:$4 sm:$0xff]  }
  0x68   :  { %1672 = vmatprep.subr.bf16.mxu0 %v2824_v45  ;;  %1836 = vmatprep.subr.bf16.mxu1 %v2827_v46  ;;  %v2919_v45 = vld [vmem:[%s4021_s1 + $0x52c] ss:$16 sps:$4 sm:$0xff]   ;;  %v2914_v46 = vld [vmem:[%s4021_s1 + $0x520] ss:$16 sps:$4 sm:$0xff]  }
  0x6b   :  { %1673 = vmatpush1.bf16.msra.mxu0 %v2822_v47  ;;  %1837 = vmatpush1.bf16.msra.mxu1 %v2825_v48  ;;  %v2917_v47 = vld [vmem:[%s4021_s1 + $0x528] ss:$16 sps:$4 sm:$0xff]   ;;  %v2922_v48 = vld [vmem:[%s4021_s1 + $0x544] ss:$16 sps:$4 sm:$0xff]  }
  0x6c   :  { %1674 = vmatprep.subr.bf16.mxu0 %v2830_v49  ;;  %1838 = vmatprep.subr.bf16.mxu1 %v2833_v50  ;;  %v2925_v49 = vld [vmem:[%s4021_s1 + $0x54c] ss:$16 sps:$4 sm:$0xff]   ;;  %v2920_v50 = vld [vmem:[%s4021_s1 + $0x540] ss:$16 sps:$4 sm:$0xff]  }
  0x6f   :  { %1675 = vmatpush1.bf16.msra.mxu0 %v2828_v51  ;;  %1839 = vmatpush1.bf16.msra.mxu1 %v2831_v52  ;;  %v2923_v51 = vld [vmem:[%s4021_s1 + $0x548] ss:$16 sps:$4 sm:$0xff]   ;;  %v2928_v52 = vld [vmem:[%s4021_s1 + $0x564] ss:$16 sps:$4 sm:$0xff]  }
  0x70   :  { %1676 = vmatprep.subr.bf16.mxu0 %v2836_v53  ;;  %1840 = vmatprep.subr.bf16.mxu1 %v2839_v54  ;;  %v2931_v53 = vld [vmem:[%s4021_s1 + $0x56c] ss:$16 sps:$4 sm:$0xff]   ;;  %v2926_v54 = vld [vmem:[%s4021_s1 + $0x560] ss:$16 sps:$4 sm:$0xff]  }
  0x73   :  { %1677 = vmatpush1.bf16.msra.mxu0 %v2834_v55  ;;  %1841 = vmatpush1.bf16.msra.mxu1 %v2837_v56  ;;  %v2929_v55 = vld [vmem:[%s4021_s1 + $0x568] ss:$16 sps:$4 sm:$0xff]   ;;  %v2934_v56 = vld [vmem:[%s4021_s1 + $0x584] ss:$16 sps:$4 sm:$0xff]  }
  0x74   :  { %1678 = vmatprep.subr.bf16.mxu0 %v2842_v57  ;;  %1842 = vmatprep.subr.bf16.mxu1 %v2845_v58  ;;  %v2937_v57 = vld [vmem:[%s4021_s1 + $0x58c] ss:$16 sps:$4 sm:$0xff]   ;;  %v2932_v58 = vld [vmem:[%s4021_s1 + $0x580] ss:$16 sps:$4 sm:$0xff]  }
  0x77   :  { %1679 = vmatpush1.bf16.msra.mxu0 %v2840_v59  ;;  %1843 = vmatpush1.bf16.msra.mxu1 %v2843_v60  ;;  %v2935_v59 = vld [vmem:[%s4021_s1 + $0x588] ss:$16 sps:$4 sm:$0xff]   ;;  %v2940_v60 = vld [vmem:[%s4021_s1 + $0x5a4] ss:$16 sps:$4 sm:$0xff]  }
  0x78   :  { %1680 = vmatprep.subr.bf16.mxu0 %v2848_v61  ;;  %1844 = vmatprep.subr.bf16.mxu1 %v2851_v62  ;;  %v2943_v61 = vld [vmem:[%s4021_s1 + $0x5ac] ss:$16 sps:$4 sm:$0xff]   ;;  %v2938_v62 = vld [vmem:[%s4021_s1 + $0x5a0] ss:$16 sps:$4 sm:$0xff]  }
  0x7b   :  { %1681 = vmatpush1.bf16.msra.mxu0 %v2846_v63  ;;  %1845 = vmatpush1.bf16.msra.mxu1 %v2849_v0  ;;  %v2941_v63 = vld [vmem:[%s4021_s1 + $0x5a8] ss:$16 sps:$4 sm:$0xff]   ;;  %v2946_v0 = vld [vmem:[%s4021_s1 + $0x5c4] ss:$16 sps:$4 sm:$0xff]  }
  0x7c   :  { %1682 = vmatprep.subr.bf16.mxu0 %v2854_v1  ;;  %1846 = vmatprep.subr.bf16.mxu1 %v2857_v2  ;;  %v2949_v1 = vld [vmem:[%s4021_s1 + $0x5cc] ss:$16 sps:$4 sm:$0xff]   ;;  %v2944_v2 = vld [vmem:[%s4021_s1 + $0x5c0] ss:$16 sps:$4 sm:$0xff]  }
  0x7f   :  { %1683 = vmatpush1.bf16.msra.mxu0 %v2852_v3  ;;  %1847 = vmatpush1.bf16.msra.mxu1 %v2855_v4  ;;  %v2947_v3 = vld [vmem:[%s4021_s1 + $0x5c8] ss:$16 sps:$4 sm:$0xff]   ;;  %v2952_v4 = vld [vmem:[%s4021_s1 + $0x5e4] ss:$16 sps:$4 sm:$0xff]  }
  0x80   :  { %1693 = vmatprep.subr.bf16.mxu0 %v2862_v5  ;;  %1857 = vmatprep.subr.bf16.mxu1 %v2865_v6  ;;  %v2955_v5 = vld [vmem:[%s4021_s1 + $0x5ec] ss:$16 sps:$4 sm:$0xff]   ;;  %v2950_v6 = vld [vmem:[%s4021_s1 + $0x5e0] ss:$16 sps:$4 sm:$0xff]  }
  0x82   :  { %1685 = vmatmul.mubr.bf16.vlgmr.msra.gmra.mrb[0].mxu0 %v2297_v7  ;;  %1849 = vmatmul.mubr.bf16.vlgmr.msra.gmra.mrb[0].mxu1 %v2297_v7  ;;  %v2953_v7 = vld [vmem:[%s4021_s1 + $0x5e8] ss:$16 sps:$4 sm:$0xff]  }
  0x83   :  { %1694 = vmatpush1.bf16.msra.mxu0 %v2860_v8  ;;  %1858 = vmatpush1.bf16.msra.mxu1 %v2863_v9  ;;  %v2960_v8 = vld [vmem:[%s4021_s1 + $0x604] ss:$16 sps:$4 sm:$0xff]   ;;  %v2963_v9 = vld [vmem:[%s4021_s1 + $0x60c] ss:$16 sps:$4 sm:$0xff]  }
  0x84   :  { %1695 = vmatprep.subr.bf16.mxu0 %v2868_v10  ;;  %1859 = vmatprep.subr.bf16.mxu1 %v2871_v12  ;;  %v2958_v10 = vld [vmem:[%s4021_s1 + $0x600] ss:$16 sps:$4 sm:$0xff]   ;;  %v2961_v12 = vld [vmem:[%s4021_s1 + $0x608] ss:$16 sps:$4 sm:$0xff]  }
  0x85   :  { %1725 = vmatprep.mubr.bf16.mxu0 %v2300_v13  ;;  %1889 = vmatprep.mubr.bf16.mxu1 %v2300_v13  ;;  %v2299_v13 = vcombine.low %v3532_v11, %v3532_v11  ;;  %v2964_v11 = vld [vmem:[%s4021_s1 + $0x620] ss:$16 sps:$4 sm:$0xff]  }
  0x87   :  { %1696 = vmatpush1.bf16.msra.mxu0 %v2866_v14  ;;  %1860 = vmatpush1.bf16.msra.mxu1 %v2869_v15  ;;  %v3730_v14 = vld [vmem:[%s4022_s0 + $0x18] sm:$0xff]  ;;  %v2966_v15 = vld [vmem:[%s4021_s1 + $0x624] ss:$16 sps:$4 sm:$0xff]  }
  0x88   :  { %1697 = vmatprep.subr.bf16.mxu0 %v2874_v16  ;;  %1861 = vmatprep.subr.bf16.mxu1 %v2877_v17  ;;  %v2969_v16 = vld [vmem:[%s4021_s1 + $0x62c] ss:$16 sps:$4 sm:$0xff]   ;;  %v2967_v17 = vld [vmem:[%s4021_s1 + $0x628] ss:$16 sps:$4 sm:$0xff]  }
  0x8b   :  { %1698 = vmatpush1.bf16.msra.mxu0 %v2872_v18  ;;  %1862 = vmatpush1.bf16.msra.mxu1 %v2875_v19  ;;  %v2302_v18 = vcombine.high %v3730_v14, %v3730_v14  ;;  %v2972_v19 = vld [vmem:[%s4021_s1 + $0x644] ss:$16 sps:$4 sm:$0xff]  }
  0x8c   :  { %1699 = vmatprep.subr.bf16.mxu0 %v2880_v20  ;;  %1863 = vmatprep.subr.bf16.mxu1 %v2883_v21  ;;  %v2975_v20 = vld [vmem:[%s4021_s1 + $0x64c] ss:$16 sps:$4 sm:$0xff]   ;;  %v2970_v21 = vld [vmem:[%s4021_s1 + $0x640] ss:$16 sps:$4 sm:$0xff]  }
  0x8f   :  { %1700 = vmatpush1.bf16.msra.mxu0 %v2878_v22  ;;  %1864 = vmatpush1.bf16.msra.mxu1 %v2881_v23  ;;  %v2973_v22 = vld [vmem:[%s4021_s1 + $0x648] ss:$16 sps:$4 sm:$0xff]   ;;  %v2978_v23 = vld [vmem:[%s4021_s1 + $0x664] ss:$16 sps:$4 sm:$0xff]  }
  0x90   :  { %1701 = vmatprep.subr.bf16.mxu0 %v2886_v24  ;;  %1865 = vmatprep.subr.bf16.mxu1 %v2889_v25  ;;  %v2981_v24 = vld [vmem:[%s4021_s1 + $0x66c] ss:$16 sps:$4 sm:$0xff]   ;;  %v2976_v25 = vld [vmem:[%s4021_s1 + $0x660] ss:$16 sps:$4 sm:$0xff]  }
  0x93   :  { %1702 = vmatpush1.bf16.msra.mxu0 %v2884_v26  ;;  %1866 = vmatpush1.bf16.msra.mxu1 %v2887_v27  ;;  %v2979_v26 = vld [vmem:[%s4021_s1 + $0x668] ss:$16 sps:$4 sm:$0xff]   ;;  %v2984_v27 = vld [vmem:[%s4021_s1 + $0x684] ss:$16 sps:$4 sm:$0xff]  }
  0x94   :  { %1703 = vmatprep.subr.bf16.mxu0 %v2892_v28  ;;  %1867 = vmatprep.subr.bf16.mxu1 %v2895_v29  ;;  %v2987_v28 = vld [vmem:[%s4021_s1 + $0x68c] ss:$16 sps:$4 sm:$0xff]   ;;  %v2982_v29 = vld [vmem:[%s4021_s1 + $0x680] ss:$16 sps:$4 sm:$0xff]  }
  0x97   :  { %1704 = vmatpush1.bf16.msra.mxu0 %v2890_v30  ;;  %1868 = vmatpush1.bf16.msra.mxu1 %v2893_v31  ;;  %v2985_v30 = vld [vmem:[%s4021_s1 + $0x688] ss:$16 sps:$4 sm:$0xff]   ;;  %v2990_v31 = vld [vmem:[%s4021_s1 + $0x6a4] ss:$16 sps:$4 sm:$0xff]  }
  0x98   :  { %1705 = vmatprep.subr.bf16.mxu0 %v2898_v32  ;;  %1869 = vmatprep.subr.bf16.mxu1 %v2901_v33  ;;  %v2993_v32 = vld [vmem:[%s4021_s1 + $0x6ac] ss:$16 sps:$4 sm:$0xff]   ;;  %v2988_v33 = vld [vmem:[%s4021_s1 + $0x6a0] ss:$16 sps:$4 sm:$0xff]  }
  0x9b   :  { %1706 = vmatpush1.bf16.msra.mxu0 %v2896_v34  ;;  %1870 = vmatpush1.bf16.msra.mxu1 %v2899_v35  ;;  %v2991_v34 = vld [vmem:[%s4021_s1 + $0x6a8] ss:$16 sps:$4 sm:$0xff]   ;;  %v2996_v35 = vld [vmem:[%s4021_s1 + $0x6c4] ss:$16 sps:$4 sm:$0xff]  }
  0x9c   :  { %1707 = vmatprep.subr.bf16.mxu0 %v2904_v36  ;;  %1871 = vmatprep.subr.bf16.mxu1 %v2907_v37  ;;  %v2999_v36 = vld [vmem:[%s4021_s1 + $0x6cc] ss:$16 sps:$4 sm:$0xff]   ;;  %v2994_v37 = vld [vmem:[%s4021_s1 + $0x6c0] ss:$16 sps:$4 sm:$0xff]  }
  0x9f   :  { %1708 = vmatpush1.bf16.msra.mxu0 %v2902_v38  ;;  %1872 = vmatpush1.bf16.msra.mxu1 %v2905_v39  ;;  %v2997_v38 = vld [vmem:[%s4021_s1 + $0x6c8] ss:$16 sps:$4 sm:$0xff]   ;;  %v3002_v39 = vld [vmem:[%s4021_s1 + $0x6e4] ss:$16 sps:$4 sm:$0xff]  }
  0xa0   :  { %1709 = vmatprep.subr.bf16.mxu0 %v2910_v40  ;;  %1873 = vmatprep.subr.bf16.mxu1 %v2913_v41  ;;  %v3005_v40 = vld [vmem:[%s4021_s1 + $0x6ec] ss:$16 sps:$4 sm:$0xff]   ;;  %v3000_v41 = vld [vmem:[%s4021_s1 + $0x6e0] ss:$16 sps:$4 sm:$0xff]  }
  0xa3   :  { %1710 = vmatpush1.bf16.msra.mxu0 %v2908_v42  ;;  %1874 = vmatpush1.bf16.msra.mxu1 %v2911_v43  ;;  %v3003_v42 = vld [vmem:[%s4021_s1 + $0x6e8] ss:$16 sps:$4 sm:$0xff]   ;;  %v3008_v43 = vld [vmem:[%s4021_s1 + $0x704] ss:$16 sps:$4 sm:$0xff]  }
  0xa4   :  { %1711 = vmatprep.subr.bf16.mxu0 %v2916_v44  ;;  %1875 = vmatprep.subr.bf16.mxu1 %v2919_v45  ;;  %v3011_v44 = vld [vmem:[%s4021_s1 + $0x70c] ss:$16 sps:$4 sm:$0xff]   ;;  %v3006_v45 = vld [vmem:[%s4021_s1 + $0x700] ss:$16 sps:$4 sm:$0xff]  }
  0xa7   :  { %1712 = vmatpush1.bf16.msra.mxu0 %v2914_v46  ;;  %1876 = vmatpush1.bf16.msra.mxu1 %v2917_v47  ;;  %v3009_v46 = vld [vmem:[%s4021_s1 + $0x708] ss:$16 sps:$4 sm:$0xff]   ;;  %v3014_v47 = vld [vmem:[%s4021_s1 + $0x724] ss:$16 sps:$4 sm:$0xff]  }
  0xa8   :  { %1713 = vmatprep.subr.bf16.mxu0 %v2922_v48  ;;  %1877 = vmatprep.subr.bf16.mxu1 %v2925_v49  ;;  %v3017_v48 = vld [vmem:[%s4021_s1 + $0x72c] ss:$16 sps:$4 sm:$0xff]   ;;  %v3012_v49 = vld [vmem:[%s4021_s1 + $0x720] ss:$16 sps:$4 sm:$0xff]  }
  0xab   :  { %1714 = vmatpush1.bf16.msra.mxu0 %v2920_v50  ;;  %1878 = vmatpush1.bf16.msra.mxu1 %v2923_v51  ;;  %v3015_v50 = vld [vmem:[%s4021_s1 + $0x728] ss:$16 sps:$4 sm:$0xff]   ;;  %v3020_v51 = vld [vmem:[%s4021_s1 + $0x744] ss:$16 sps:$4 sm:$0xff]  }
  0xac   :  { %1715 = vmatprep.subr.bf16.mxu0 %v2928_v52  ;;  %1879 = vmatprep.subr.bf16.mxu1 %v2931_v53  ;;  %v3023_v52 = vld [vmem:[%s4021_s1 + $0x74c] ss:$16 sps:$4 sm:$0xff]   ;;  %v3018_v53 = vld [vmem:[%s4021_s1 + $0x740] ss:$16 sps:$4 sm:$0xff]  }
  0xaf   :  { %1716 = vmatpush1.bf16.msra.mxu0 %v2926_v54  ;;  %1880 = vmatpush1.bf16.msra.mxu1 %v2929_v55  ;;  %v3021_v54 = vld [vmem:[%s4021_s1 + $0x748] ss:$16 sps:$4 sm:$0xff]   ;;  %v3026_v55 = vld [vmem:[%s4021_s1 + $0x764] ss:$16 sps:$4 sm:$0xff]  }
  0xb0   :  { %1717 = vmatprep.subr.bf16.mxu0 %v2934_v56  ;;  %1881 = vmatprep.subr.bf16.mxu1 %v2937_v57  ;;  %v3029_v56 = vld [vmem:[%s4021_s1 + $0x76c] ss:$16 sps:$4 sm:$0xff]   ;;  %v3024_v57 = vld [vmem:[%s4021_s1 + $0x760] ss:$16 sps:$4 sm:$0xff]  }
  0xb3   :  { %1718 = vmatpush1.bf16.msra.mxu0 %v2932_v58  ;;  %1882 = vmatpush1.bf16.msra.mxu1 %v2935_v59  ;;  %v3027_v58 = vld [vmem:[%s4021_s1 + $0x768] ss:$16 sps:$4 sm:$0xff]   ;;  %v3032_v59 = vld [vmem:[%s4021_s1 + $0x784] ss:$16 sps:$4 sm:$0xff]  }
  0xb4   :  { %1719 = vmatprep.subr.bf16.mxu0 %v2940_v60  ;;  %1883 = vmatprep.subr.bf16.mxu1 %v2943_v61  ;;  %v3035_v60 = vld [vmem:[%s4021_s1 + $0x78c] ss:$16 sps:$4 sm:$0xff]   ;;  %v3030_v61 = vld [vmem:[%s4021_s1 + $0x780] ss:$16 sps:$4 sm:$0xff]  }
  0xb7   :  { %1720 = vmatpush1.bf16.msra.mxu0 %v2938_v62  ;;  %1884 = vmatpush1.bf16.msra.mxu1 %v2941_v63  ;;  %v3033_v62 = vld [vmem:[%s4021_s1 + $0x788] ss:$16 sps:$4 sm:$0xff]   ;;  %v3038_v63 = vld [vmem:[%s4021_s1 + $0x7a4] ss:$16 sps:$4 sm:$0xff]  }
  0xb8   :  { %1721 = vmatprep.subr.bf16.mxu0 %v2946_v0  ;;  %1885 = vmatprep.subr.bf16.mxu1 %v2949_v1  ;;  %v3041_v0 = vld [vmem:[%s4021_s1 + $0x7ac] ss:$16 sps:$4 sm:$0xff]   ;;  %v3036_v1 = vld [vmem:[%s4021_s1 + $0x7a0] ss:$16 sps:$4 sm:$0xff]  }
  0xbb   :  { %1722 = vmatpush1.bf16.msra.mxu0 %v2944_v2  ;;  %1886 = vmatpush1.bf16.msra.mxu1 %v2947_v3  ;;  %v3039_v2 = vld [vmem:[%s4021_s1 + $0x7a8] ss:$16 sps:$4 sm:$0xff]   ;;  %v3044_v3 = vld [vmem:[%s4021_s1 + $0x7c4] ss:$16 sps:$4 sm:$0xff]  }
  0xbc   :  { %1723 = vmatprep.subr.bf16.mxu0 %v2952_v4  ;;  %1887 = vmatprep.subr.bf16.mxu1 %v2955_v5  ;;  %v3047_v4 = vld [vmem:[%s4021_s1 + $0x7cc] ss:$16 sps:$4 sm:$0xff]   ;;  %v3042_v5 = vld [vmem:[%s4021_s1 + $0x7c0] ss:$16 sps:$4 sm:$0xff]  }
  0xbf   :  { %1724 = vmatpush1.bf16.msra.mxu0 %v2950_v6  ;;  %1888 = vmatpush1.bf16.msra.mxu1 %v2953_v7  ;;  %v3045_v6 = vld [vmem:[%s4021_s1 + $0x7c8] ss:$16 sps:$4 sm:$0xff]   ;;  %v3050_v7 = vld [vmem:[%s4021_s1 + $0x7e4] ss:$16 sps:$4 sm:$0xff]  }
  0xc0   :  { %1734 = vmatprep.subr.bf16.mxu0 %v2960_v8  ;;  %1898 = vmatprep.subr.bf16.mxu1 %v2963_v9  ;;  %v3053_v8 = vld [vmem:[%s4021_s1 + $0x7ec] ss:$16 sps:$4 sm:$0xff]   ;;  %v3048_v9 = vld [vmem:[%s4021_s1 + $0x7e0] ss:$16 sps:$4 sm:$0xff]  }
  0xc2   :  { %1726 = vmatmul.mubr.bf16.vlgmr.msra.gmra.mrb[0].mxu0 %v2299_v13  ;;  %1890 = vmatmul.mubr.bf16.vlgmr.msra.gmra.mrb[0].mxu1 %v2299_v13  ;;  %v3057_v13 = vld [vmem:[%s4023_s3 + $0xc0] sm:$0xff]  }
  0xc3   :  { %1735 = vmatpush1.bf16.msra.mxu0 %v2958_v10  ;;  %1899 = vmatpush1.bf16.msra.mxu1 %v2961_v12  ;;  %v3051_v10 = vld [vmem:[%s4021_s1 + $0x7e8] ss:$16 sps:$4 sm:$0xff]   ;;  %v3056_v12 = vld [vmem:[%s4023_s3 + $0x40] sm:$0xff]  }
  0xc4   :  { %1736 = vmatprep.subr.bf16.mxu0 %v2966_v15  ;;  %1900 = vmatprep.subr.bf16.mxu1 %v2969_v16  ;;  %v2301_v15 = vcombine.low %v3730_v14, %v3730_v14  ;;  %v3058_v16 = vld [vmem:[%s4023_s3] sm:$0xff]   ;;  %v3061_v14 = vld [vmem:[%s4023_s3 + $0xc8] sm:$0xff]  }
  0xc5   :  { %1766 = vmatprep.mubr.bf16.mxu0 %v2302_v18  ;;  %1930 = vmatprep.mubr.bf16.mxu1 %v2302_v18  ;;  %v3062_v18 = vld [vmem:[%s4023_s3 + $0x8] sm:$0xff]  }
  0xc7   :  { %1737 = vmatpush1.bf16.msra.mxu0 %v2964_v11  ;;  %1901 = vmatpush1.bf16.msra.mxu1 %v2967_v17  ;;  %v3059_v11 = vld [vmem:[%s4023_s3 + $0x80] sm:$0xff]   ;;  %v3060_v17 = vld [vmem:[%s4023_s3 + $0x48] sm:$0xff]  }
  0xc8   :  { %1738 = vmatprep.subr.bf16.mxu0 %v2972_v19  ;;  %1902 = vmatprep.subr.bf16.mxu1 %v2975_v20  ;;  %v3063_v19 = vld [vmem:[%s4023_s3 + $0x88] sm:$0xff]   ;;  %v3064_v20 = vld [vmem:[%s4023_s3 + $0x50] sm:$0xff]  }
  0xcb   :  { %1739 = vmatpush1.bf16.msra.mxu0 %v2970_v21  ;;  %1903 = vmatpush1.bf16.msra.mxu1 %v2973_v22  ;;  %v3065_v21 = vld [vmem:[%s4023_s3 + $0xd0] sm:$0xff]  }
  0xcc   :  { %1740 = vmatprep.subr.bf16.mxu0 %v2978_v23  ;;  %1904 = vmatprep.subr.bf16.mxu1 %v2981_v24  ;;  %v3066_v22 = vld [vmem:[%s4023_s3 + $0x10] sm:$0xff]   ;;  %v3068_v24 = vld [vmem:[%s4023_s3 + $0x58] sm:$0xff]  }
  0xcd   :  { %v3067_v23 = vld [vmem:[%s4023_s3 + $0x90] sm:$0xff]  }
  0xcf   :  { %1741 = vmatpush1.bf16.msra.mxu0 %v2976_v25  ;;  %1905 = vmatpush1.bf16.msra.mxu1 %v2979_v26  ;;  %v3069_v25 = vld [vmem:[%s4023_s3 + $0xd8] sm:$0xff]  }
  0xd0   :  { %1742 = vmatprep.subr.bf16.mxu0 %v2984_v27  ;;  %1906 = vmatprep.subr.bf16.mxu1 %v2987_v28  ;;  %v3070_v26 = vld [vmem:[%s4023_s3 + $0x18] sm:$0xff]   ;;  %v3072_v28 = vld [vmem:[%s4023_s3 + $0x60] sm:$0xff]  }
  0xd1   :  { %v3071_v27 = vld [vmem:[%s4023_s3 + $0x98] sm:$0xff]  }
  0xd3   :  { %1743 = vmatpush1.bf16.msra.mxu0 %v2982_v29  ;;  %1907 = vmatpush1.bf16.msra.mxu1 %v2985_v30  ;;  %v3073_v29 = vld [vmem:[%s4023_s3 + $0xe0] sm:$0xff]  }
  0xd4   :  { %1744 = vmatprep.subr.bf16.mxu0 %v2990_v31  ;;  %1908 = vmatprep.subr.bf16.mxu1 %v2993_v32  ;;  %v3074_v30 = vld [vmem:[%s4023_s3 + $0x20] sm:$0xff]   ;;  %v3076_v32 = vld [vmem:[%s4023_s3 + $0x68] sm:$0xff]  }
  0xd5   :  { %v3075_v31 = vld [vmem:[%s4023_s3 + $0xa0] sm:$0xff]  }
  0xd7   :  { %1745 = vmatpush1.bf16.msra.mxu0 %v2988_v33  ;;  %1909 = vmatpush1.bf16.msra.mxu1 %v2991_v34  ;;  %v3077_v33 = vld [vmem:[%s4023_s3 + $0xe8] sm:$0xff]  }
  0xd8   :  { %1746 = vmatprep.subr.bf16.mxu0 %v2996_v35  ;;  %1910 = vmatprep.subr.bf16.mxu1 %v2999_v36  ;;  %v3078_v34 = vld [vmem:[%s4023_s3 + $0x28] sm:$0xff]   ;;  %v3080_v36 = vld [vmem:[%s4023_s3 + $0x70] sm:$0xff]  }
  0xd9   :  { %v3079_v35 = vld [vmem:[%s4023_s3 + $0xa8] sm:$0xff]  }
  0xdb   :  { %1747 = vmatpush1.bf16.msra.mxu0 %v2994_v37  ;;  %1911 = vmatpush1.bf16.msra.mxu1 %v2997_v38  ;;  %v3081_v37 = vld [vmem:[%s4023_s3 + $0xf0] sm:$0xff]  }
  0xdc   :  { %1748 = vmatprep.subr.bf16.mxu0 %v3002_v39  ;;  %1912 = vmatprep.subr.bf16.mxu1 %v3005_v40  ;;  %v3082_v38 = vld [vmem:[%s4023_s3 + $0x30] sm:$0xff]   ;;  %v3084_v40 = vld [vmem:[%s4023_s3 + $0x78] sm:$0xff]  }
  0xdd   :  { %v3083_v39 = vld [vmem:[%s4023_s3 + $0xb0] sm:$0xff]  }
  0xdf   :  { %1749 = vmatpush1.bf16.msra.mxu0 %v3000_v41  ;;  %1913 = vmatpush1.bf16.msra.mxu1 %v3003_v42  ;;  %v3085_v41 = vld [vmem:[%s4023_s3 + $0xf8] sm:$0xff]  }
  0xe0   :  { %1750 = vmatprep.subr.bf16.mxu0 %v3008_v43  ;;  %1914 = vmatprep.subr.bf16.mxu1 %v3011_v44  ;;  %v3086_v42 = vld [vmem:[%s4023_s3 + $0x38] sm:$0xff]   ;;  %v283_v44 = vlaneseq }
  0xe1   :  { %v3087_v43 = vld [vmem:[%s4023_s3 + $0xb8] sm:$0xff]  }
  0xe3   :  { %1751 = vmatpush1.bf16.msra.mxu0 %v3006_v45  ;;  %1915 = vmatpush1.bf16.msra.mxu1 %v3009_v46  ;;  %v284_v45 = vshrl.u32 %v283_v44, 7 }
  0xe4   :  { %1752 = vmatprep.subr.bf16.mxu0 %v3014_v47  ;;  %1916 = vmatprep.subr.bf16.mxu1 %v3017_v48  ;;  %v281_v48 = vld [vmem:[%s4024_s2] sm:$0xf] }
  0xe5   :  { %v285_v46 = vsub.s32 0, %v284_v45  ;;  %v293_v47 = vsub.s32 2, %v284_v45 }
  0xe7   :  { %1753 = vmatpush1.bf16.msra.mxu0 %v3012_v49  ;;  %1917 = vmatpush1.bf16.msra.mxu1 %v3015_v50  ;;  %v289_v49 = vsub.s32 1, %v284_v45  ;;  %v297_v50 = vsub.s32 3, %v284_v45 }
  0xe8   :  { %1754 = vmatprep.subr.bf16.mxu0 %v3020_v51  ;;  %1918 = vmatprep.subr.bf16.mxu1 %v3023_v52  ;;  %v286_v51 = vrot.slane %v281_v48, %v285_v46  ;;  %v294_v52 = vrot.slane %v281_v48, %v293_v47 }
  0xeb   :  { %1755 = vmatpush1.bf16.msra.mxu0 %v3018_v53  ;;  %1919 = vmatpush1.bf16.msra.mxu1 %v3021_v54  ;;  %v290_v53 = vrot.slane %v281_v48, %v289_v49  ;;  %v298_v54 = vrot.slane %v281_v48, %v297_v50 }
  0xec   :  { %1756 = vmatprep.subr.bf16.mxu0 %v3026_v55  ;;  %1920 = vmatprep.subr.bf16.mxu1 %v3029_v56 }
  0xef   :  { %1757 = vmatpush1.bf16.msra.mxu0 %v3024_v57  ;;  %1921 = vmatpush1.bf16.msra.mxu1 %v3027_v58 }
  0xf0   :  { %1758 = vmatprep.subr.bf16.mxu0 %v3032_v59  ;;  %1922 = vmatprep.subr.bf16.mxu1 %v3035_v60 }
  0xf3   :  { %1759 = vmatpush1.bf16.msra.mxu0 %v3030_v61  ;;  %1923 = vmatpush1.bf16.msra.mxu1 %v3033_v62 }
  0xf4   :  { %1760 = vmatprep.subr.bf16.mxu0 %v3038_v63  ;;  %1924 = vmatprep.subr.bf16.mxu1 %v3041_v0 }
  0xf7   :  { %1761 = vmatpush1.bf16.msra.mxu0 %v3036_v1  ;;  %1925 = vmatpush1.bf16.msra.mxu1 %v3039_v2 }
  0xf8   :  { %1762 = vmatprep.subr.bf16.mxu0 %v3044_v3  ;;  %1926 = vmatprep.subr.bf16.mxu1 %v3047_v4 }
  0xfb   :  { %1763 = vmatpush1.bf16.msra.mxu0 %v3042_v5  ;;  %1927 = vmatpush1.bf16.msra.mxu1 %v3045_v6 }
  0xfc   :  { %1764 = vmatprep.subr.bf16.mxu0 %v3050_v7  ;;  %1928 = vmatprep.subr.bf16.mxu1 %v3053_v8 }
  0xff   :  { %1765 = vmatpush1.bf16.msra.mxu0 %v3048_v9  ;;  %1929 = vmatpush1.bf16.msra.mxu1 %v3051_v10 }
 0x100   :  { %2592 = vmatprep.subr.bf16.mxu0 %v3056_v12  ;;  %2614 = vmatprep.subr.bf16.mxu1 %v3057_v13 }
 0x102   :  { %1767 = vmatmul.mubr.bf16.vlgmr.msra.gmra.mrb[0].mxu0 %v2301_v15  ;;  %1931 = vmatmul.mubr.bf16.vlgmr.msra.gmra.mrb[0].mxu1 %v2301_v15  ;;  %v2559_v15 = vld [vmem:[%s4025_s4] ss:$0 sm:$0xff] }
 0x103   :  { %2593 = vmatpush3.bf16.msra.mxu0 %v3058_v16  ;;  %2615 = vmatpush3.bf16.msra.mxu1 %v3059_v11 }
 0x104   :  { %2594 = vmatprep.subr.bf16.mxu0 %v3060_v17  ;;  %2616 = vmatprep.subr.bf16.mxu1 %v3061_v14 }
 0x107   :  { %2595 = vmatpush3.bf16.msra.mxu0 %v3062_v18  ;;  %2617 = vmatpush3.bf16.msra.mxu1 %v3063_v19 }
 0x108   :  { %2596 = vmatprep.subr.bf16.mxu0 %v3064_v20  ;;  %2618 = vmatprep.subr.bf16.mxu1 %v3065_v21 }
 0x10b   :  { %2597 = vmatpush3.bf16.msra.mxu0 %v3066_v22  ;;  %2619 = vmatpush3.bf16.msra.mxu1 %v3067_v23 }
 0x10c   :  { %2598 = vmatprep.subr.bf16.mxu0 %v3068_v24  ;;  %2620 = vmatprep.subr.bf16.mxu1 %v3069_v25 }
 0x10f   :  { %2599 = vmatpush3.bf16.msra.mxu0 %v3070_v26  ;;  %2621 = vmatpush3.bf16.msra.mxu1 %v3071_v27 }
 0x110   :  { %2600 = vmatprep.subr.bf16.mxu0 %v3072_v28  ;;  %2622 = vmatprep.subr.bf16.mxu1 %v3073_v29 }
 0x113   :  { %2601 = vmatpush3.bf16.msra.mxu0 %v3074_v30  ;;  %2623 = vmatpush3.bf16.msra.mxu1 %v3075_v31 }
 0x114   :  { %2602 = vmatprep.subr.bf16.mxu0 %v3076_v32  ;;  %2624 = vmatprep.subr.bf16.mxu1 %v3077_v33 }
 0x117   :  { %2603 = vmatpush3.bf16.msra.mxu0 %v3078_v34  ;;  %2625 = vmatpush3.bf16.msra.mxu1 %v3079_v35 }
 0x118   :  { %2604 = vmatprep.subr.bf16.mxu0 %v3080_v36  ;;  %2626 = vmatprep.subr.bf16.mxu1 %v3081_v37 }
 0x11b   :  { %2605 = vmatpush3.bf16.msra.mxu0 %v3082_v38  ;;  %2627 = vmatpush3.bf16.msra.mxu1 %v3083_v39 }
 0x11c   :  { %2606 = vmatprep.subr.bf16.mxu0 %v3084_v40  ;;  %2628 = vmatprep.subr.bf16.mxu1 %v3085_v41 }
 0x11f   :  { %2607 = vmatpush3.bf16.msra.mxu0 %v3086_v42  ;;  %2629 = vmatpush3.bf16.msra.mxu1 %v3087_v43 }
 0x1d5   :  { %v1768_v55 = vpop.f32.mrb[0].mxu0  ;;  %v1932_v56 = vpop.f32.mrb[0].mxu1 }
 0x1d6   :  { %v2636_v57 = vadd.f32 %v1768_v55, %v286_v51  ;;  %v2638_v58 = vadd.f32 %v1932_v56, %v294_v52  ;;  %v1770_v59 = vpop.f32.mrb[1].mxu0  ;;  %v1934_v60 = vpop.f32.mrb[1].mxu1 }
 0x1d7   :  { %v2637_v61 = vadd.f32 %v1770_v59, %v290_v53  ;;  %v2639_v62 = vadd.f32 %v1934_v60, %v298_v54  ;;  %v1772_v63 = vpop.f32.mrb[2].mxu0  ;;  %v1936_v0 = vpop.f32.mrb[2].mxu1 }
 0x1d8   :  { %v1939_v1 = vmax.f32 %v2636_v57, 0.0  ;;  %v1941_v2 = vmax.f32 %v2638_v58, 0.0  ;;  %v1773_v3 = vpop.f32.mrb[3].mxu0  ;;  %v1937_v4 = vpop.f32.mrb[3].mxu1 }
 0x1d9   :  { %v1940_v5 = vmax.f32 %v2637_v61, 0.0  ;;  %v1942_v6 = vmax.f32 %v2639_v62, 0.0 }
 0x1da   :  { %v1943_v9 = vpack.c.bf16 %v1939_v1, %v1939_v1  ;;  %v1945_v10 = vpack.c.bf16 %v1941_v2, %v1941_v2 }
 0x1db   :  { %v1944_v7 = vpack.c.bf16 %v1940_v5, %v1940_v5  ;;  %v1946_v8 = vpack.c.bf16 %v1942_v6, %v1942_v6 }
 0x1dd   :  { %2242 = vmatprep.mubr.bf16.mxu0 %v1944_v7  ;;  %2282 = vmatprep.mubr.bf16.mxu1 %v1946_v8 }
 0x1de   :  { %2243 = vmatmul.mubr.bf16.vlgmr.msra.gmra.mrb[4].mxu0 %v1943_v9  ;;  %2283 = vmatmul.mubr.bf16.vlgmr.msra.gmra.mrb[4].mxu1 %v1945_v10 }
 0x2b1   :  { %v2608_v12 = vpop.f32.mrb[4].mxu0  ;;  %v2630_v13 = vpop.f32.mrb[4].mxu1 }
 0x2b2   :  { %v2609_v16 = vpop.f32.mrb[5].mxu0  ;;  %v2631_v11 = vpop.f32.mrb[5].mxu1 }
 0x2b3   :  { %v2610_v17 = vadd.f32 %v2609_v16, %v2608_v12  ;;  %v2632_v14 = vadd.f32 %v2631_v11, %v2630_v13  ;;  %v2611_v18 = vpop.f32.mrb[6].mxu0  ;;  %v2633_v19 = vpop.f32.mrb[6].mxu1 }
 0x2b4   :  { %v2612_v20 = vpop.f32.mrb[7].mxu0  ;;  %v2634_v21 = vpop.f32.mrb[7].mxu1 }
 0x2b5   :  { %v2245_v22 = vadd.f32 %v2610_v17, %v2559_v15 }
 0x2b7   :  { %v2285_v23 = vadd.f32 %v2632_v14, %v2245_v22 }
 0x2b9   :  { %2290 = vst [vmem:[%s4026_s5] sm:$0xff] %v2285_v23 }

</bundles_post_ra>
